<compile_context>
chip_gen: v7x
topology: tpu7x:2x2x1
jax: 0.10.0
libtpu: 0.0.40
codegen_flags: <defaults>
</compile_context>

<pallas_src>
import jax
import jax.numpy as jnp
import numpy as np
from jax.experimental import pallas as pl
from jax.experimental.pallas import tpu as pltpu

LANE = 128  # TPU lane width; every lane dim is padded to this single-tile width.


def _round_up(v, m):
    return ((v + m - 1) // m) * m


def _make_kernel(mxu_dtype):
    """Fused forward kernel: layer1 -> attention map -> mid -> layer2."""

    def kernel(x_ref, vecs_ref, params_ref, o_ref):
        x = x_ref[...]                          # (N_pad, 128) f32
        vecs = vecs_ref[...]                    # (8, 128): b1,q1,k1,v1,b2,bias,0,0
        b1 = vecs[0:1, :]
        q1 = vecs[1:2, :]
        k1 = vecs[2:3, :]
        v1 = vecs[3:4, :]
        b2 = vecs[4:5, :]
        bias = vecs[5:6, :]                     # 0 for col<H, -1e30 for padded cols

        w1 = params_ref[0]                      # (128, 128) = w1.T zero-padded
        w2 = params_ref[1]                      # (128, 128) = w2.T zero-padded

        # ---- layer1: Linear + ReLU ----------------------------------------
        h = jnp.dot(x.astype(mxu_dtype), w1.astype(mxu_dtype),
                    preferred_element_type=jnp.float32) + b1       # (N_pad, 128)
        h = jnp.maximum(h, 0.0)   # padded hidden columns stay exactly 0

        # ---- attention map: softmax((h*q).T @ (h*k), axis=-1) --------------
        # K = N_pad (=8/16) contraction: keep f32 operands regardless of
        # mxu_dtype; bf16 casts here are VPU filler with zero MXU-pass payback.
        xq = h * q1
        xk = h * k1
        scores = jax.lax.dot_general(xq, xk, (((0,), (0,)), ((), ())),
                                     preferred_element_type=jnp.float32)  # (128,128)
        scores = scores + bias                  # additive mask of padded columns

        m = jnp.max(scores, axis=-1, keepdims=True)
        e = jnp.exp(scores - m)
        denom = jnp.sum(e, axis=-1, keepdims=True)
        att = e / denom                         # exact divide (strict parity; free here)
        # NOTE: padded rows (i >= H) of `att` become uniform 1/H distributions.
        # That is harmless ONLY because (h*v1) has exactly-zero padded columns
        # which annihilate those rows in `mid`. Keep padded lanes of h/v1 at 0.

        # ---- mid_out = (h * v1) @ att_map -----------------------------------
        mid = jnp.dot((h * v1).astype(mxu_dtype), att.astype(mxu_dtype),
                      preferred_element_type=jnp.float32)          # (N_pad, 128)

        # ---- layer2: Linear (lane-dense padded output slab) ------------------
        o_ref[...] = jnp.dot(mid.astype(mxu_dtype), w2.astype(mxu_dtype),
                             preferred_element_type=jnp.float32) + b2

    return kernel


def prepare_params(w1, b1, q1, k1, v1, w2, b2):
    """One-time parameter prep (pad/transpose/stack). Not in the per-call path.

    PyTorch layout: w1 (H, D), b1 (H,), w2 (O, H), b2 (O,), q1/k1/v1 (H,).
    Returns:
      vecs   (8, 128)      rows: b1, q1, k1, v1, b2, softmax-bias, 0, 0
      params (2, 128, 128) params[0] = w1.T padded, params[1] = w2.T padded
    """
    H, D = w1.shape
    O = w2.shape[0]
    assert D <= LANE and H <= LANE and O <= LANE, "single-tile fast path only"

    def row(v):
        v = jnp.asarray(v, jnp.float32).reshape(-1)
        return jnp.pad(v, (0, LANE - v.shape[0]))

    bias = jnp.where(jnp.arange(LANE) < H, 0.0, -1e30).astype(jnp.float32)
    zero = jnp.zeros((LANE,), jnp.float32)
    vecs = jnp.stack([row(b1), row(q1), row(k1), row(v1), row(b2), bias, zero, zero], 0)

    w1_p = jnp.pad(jnp.asarray(w1, jnp.float32).T, ((0, LANE - D), (0, LANE - H)))
    w2_p = jnp.pad(jnp.asarray(w2, jnp.float32).T, ((0, LANE - H), (0, LANE - O)))
    params = jnp.stack([w1_p, w2_p], 0)
    return vecs, params


def forward_padded(x_p, vecs, params, *, mxu_dtype=jnp.float32):
    """Runs the fused kernel on an already-padded (N_pad, 128) input."""
    n_pad = x_p.shape[0]
    cost = pl.CostEstimate(
        flops=4 * 2 * n_pad * LANE * LANE,          # 4 small matmuls
        transcendentals=LANE * LANE,                # exp over the scores tile
        bytes_accessed=4 * (x_p.size + vecs.size + params.size + n_pad * LANE),
    )
    vmem = pltpu.MemorySpace.VMEM
    return pl.pallas_call(
        _make_kernel(mxu_dtype),
        out_shape=jax.ShapeDtypeStruct((n_pad, LANE), jnp.float32),
        in_specs=[pl.BlockSpec(memory_space=vmem)] * 3,
        out_specs=pl.BlockSpec(memory_space=vmem),
        cost_estimate=cost,
    )(x_p, vecs, params)


def transformer_classifier(x, vecs, params, output_dim, *, mxu_dtype=jnp.float32):
    """Thin per-call wrapper: pad x, run the fused kernel, slice the output."""
    N, D = x.shape
    sub = 16 if mxu_dtype == jnp.bfloat16 else 8    # bf16 packs 16 rows / vreg
    n_pad = _round_up(N, sub)
    x_p = jnp.pad(x.astype(jnp.float32), ((0, n_pad - N), (0, LANE - D)))
    out = forward_padded(x_p, vecs, params, mxu_dtype=mxu_dtype)
    return out[:N, :output_dim]


def reference(x, w1, b1, q1, k1, v1, w2, b2):
    h = jnp.maximum(x @ w1.T + b1, 0.0)
    att = jax.nn.softmax((h * q1).T @ (h * k1), axis=-1)
    mid = (h * v1) @ att
    return mid @ w2.T + b2


if __name__ == "__main__":
    # Small shapes consistent with the module: batch N=8, input_dim=32,
    # hidden_dim=90 (module default), output_dim=10.
    N, D, H, O = 8, 32, 90, 10

    key = jax.random.PRNGKey(0)
    ks = jax.random.split(key, 8)

    x = jax.random.normal(ks[0], (N, D), dtype=jnp.float32)

    # Deterministic parameter init (shapes match nn.Linear / nn.Parameter).
    bound1 = 1.0 / np.sqrt(D)
    w1 = jax.random.uniform(ks[1], (H, D), jnp.float32, -bound1, bound1)  # Linear(D,H).weight
    b1 = jax.random.uniform(ks[2], (H,), jnp.float32, -bound1, bound1)
    bound2 = 1.0 / np.sqrt(H)
    w2 = jax.random.uniform(ks[3], (O, H), jnp.float32, -bound2, bound2)  # Linear(H,O).weight
    b2 = jax.random.uniform(ks[4], (O,), jnp.float32, -bound2, bound2)
    q1 = jax.random.uniform(ks[5], (H,), jnp.float32)                     # torch.rand
    k1 = jax.random.uniform(ks[6], (H,), jnp.float32)
    v1 = jax.random.uniform(ks[7], (H,), jnp.float32)

    # One-time prep (hoisted out of the hot path per the review).
    vecs, params = prepare_params(w1, b1, q1, k1, v1, w2, b2)
    vecs, params = jax.block_until_ready((vecs, params))

    # f32 MXU operands: strict parity + correct choice for v5e (no bf16 VPU/EUP).
    out = transformer_classifier(x, vecs, params, O, mxu_dtype=jnp.float32)
    out = jax.block_until_ready(out)

    ref = reference(x, w1, b1, q1, k1, v1, w2, b2)
    assert out.shape == (N, O)
    assert np.allclose(np.asarray(out), np.asarray(ref), rtol=1e-4, atol=1e-4), (
        np.max(np.abs(np.asarray(out) - np.asarray(ref))))

    print("KERNEL_OK")
</pallas_src>

<mosaic_0001>
module attributes {stable_mosaic.version = 11 : i64} {
  func.func @kernel(%arg0: memref<8x128xf32, #tpu.memory_space<vmem>>, %arg1: memref<8x128xf32, #tpu.memory_space<vmem>>, %arg2: memref<2x128x128xf32, #tpu.memory_space<vmem>>, %arg3: memref<8x128xf32, #tpu.memory_space<vmem>>) attributes {dimension_semantics = [], scalar_prefetch = 0 : i64, scratch_operands = 0 : i64, tpu.core_type = #tpu.core_type<tc>} {
    %c0 = arith.constant 0 : index
    %c0_0 = arith.constant 0 : index
    %0 = vector.load %arg0[%c0, %c0_0] : memref<8x128xf32, #tpu.memory_space<vmem>>, vector<8x128xf32>
    %c0_1 = arith.constant 0 : index
    %c0_2 = arith.constant 0 : index
    %1 = vector.load %arg1[%c0_1, %c0_2] : memref<8x128xf32, #tpu.memory_space<vmem>>, vector<8x128xf32>
    %2 = vector.extract_strided_slice %1 {offsets = [0, 0], sizes = [1, 128], strides = [1, 1]} : vector<8x128xf32> to vector<1x128xf32>
    %3 = vector.extract_strided_slice %1 {offsets = [1, 0], sizes = [1, 128], strides = [1, 1]} : vector<8x128xf32> to vector<1x128xf32>
    %4 = vector.extract_strided_slice %1 {offsets = [2, 0], sizes = [1, 128], strides = [1, 1]} : vector<8x128xf32> to vector<1x128xf32>
    %5 = vector.extract_strided_slice %1 {offsets = [3, 0], sizes = [1, 128], strides = [1, 1]} : vector<8x128xf32> to vector<1x128xf32>
    %6 = vector.extract_strided_slice %1 {offsets = [4, 0], sizes = [1, 128], strides = [1, 1]} : vector<8x128xf32> to vector<1x128xf32>
    %7 = vector.extract_strided_slice %1 {offsets = [5, 0], sizes = [1, 128], strides = [1, 1]} : vector<8x128xf32> to vector<1x128xf32>
    %c0_3 = arith.constant 0 : index
    %c0_4 = arith.constant 0 : index
    %c0_5 = arith.constant 0 : index
    %8 = vector.load %arg2[%c0_3, %c0_4, %c0_5] : memref<2x128x128xf32, #tpu.memory_space<vmem>>, vector<1x128x128xf32>
    %9 = vector.shape_cast %8 : vector<1x128x128xf32> to vector<128x128xf32>
    %c1 = arith.constant 1 : index
    %c0_6 = arith.constant 0 : index
    %c0_7 = arith.constant 0 : index
    %10 = vector.load %arg2[%c1, %c0_6, %c0_7] : memref<2x128x128xf32, #tpu.memory_space<vmem>>, vector<1x128x128xf32>
    %11 = vector.shape_cast %10 : vector<1x128x128xf32> to vector<128x128xf32>
    %cst = arith.constant dense<0.000000e+00> : vector<8x128xf32>
    %12 = tpu.matmul %0, %9, %cst {dimension_numbers = #tpu.dot_dimension_numbers<[1], [0], [0], [1], [0, 0, 1, 1], [], []>} : vector<8x128xf32>, vector<128x128xf32>, vector<8x128xf32> -> vector<8x128xf32>
    %13 = vector.broadcast %2 : vector<1x128xf32> to vector<8x128xf32>
    %14 = arith.addf %12, %13 : vector<8x128xf32>
    %cst_8 = arith.constant 0.000000e+00 : f32
    %15 = vector.broadcast %cst_8 : f32 to vector<8x128xf32>
    %16 = arith.maximumf %14, %15 : vector<8x128xf32>
    %17 = vector.broadcast %3 : vector<1x128xf32> to vector<8x128xf32>
    %18 = arith.mulf %16, %17 : vector<8x128xf32>
    %19 = vector.broadcast %4 : vector<1x128xf32> to vector<8x128xf32>
    %20 = arith.mulf %16, %19 : vector<8x128xf32>
    %cst_9 = arith.constant dense<0.000000e+00> : vector<128x128xf32>
    %21 = tpu.matmul %18, %20, %cst_9 {dimension_numbers = #tpu.dot_dimension_numbers<[0], [0], [1], [1], [0, 1, 1, 1], [], []>} : vector<8x128xf32>, vector<8x128xf32>, vector<128x128xf32> -> vector<128x128xf32>
    %22 = vector.broadcast %7 : vector<1x128xf32> to vector<128x128xf32>
    %23 = arith.addf %21, %22 : vector<128x128xf32>
    %cst_10 = arith.constant dense<0xFF800000> : vector<128xf32>
    %24 = vector.multi_reduction <maximumf>, %23, %cst_10 [1] : vector<128x128xf32> to vector<128xf32>
    %25 = vector.shape_cast %24 : vector<128xf32> to vector<128x1xf32>
    %26 = vector.broadcast %25 : vector<128x1xf32> to vector<128x128xf32>
    %27 = arith.subf %23, %26 : vector<128x128xf32>
    %28 = math.exp %27 : vector<128x128xf32>
    %cst_11 = arith.constant dense<0.000000e+00> : vector<128xf32>
    %29 = vector.multi_reduction <add>, %28, %cst_11 [1] : vector<128x128xf32> to vector<128xf32>
    %30 = vector.shape_cast %29 : vector<128xf32> to vector<128x1xf32>
    %31 = vector.broadcast %30 : vector<128x1xf32> to vector<128x128xf32>
    %32 = arith.divf %28, %31 : vector<128x128xf32>
    %33 = vector.broadcast %5 : vector<1x128xf32> to vector<8x128xf32>
    %34 = arith.mulf %16, %33 : vector<8x128xf32>
    %cst_12 = arith.constant dense<0.000000e+00> : vector<8x128xf32>
    %35 = tpu.matmul %34, %32, %cst_12 {dimension_numbers = #tpu.dot_dimension_numbers<[1], [0], [0], [1], [0, 0, 1, 1], [], []>} : vector<8x128xf32>, vector<128x128xf32>, vector<8x128xf32> -> vector<8x128xf32>
    %cst_13 = arith.constant dense<0.000000e+00> : vector<8x128xf32>
    %36 = tpu.matmul %35, %11, %cst_13 {dimension_numbers = #tpu.dot_dimension_numbers<[1], [0], [0], [1], [0, 0, 1, 1], [], []>} : vector<8x128xf32>, vector<128x128xf32>, vector<8x128xf32> -> vector<8x128xf32>
    %37 = vector.broadcast %6 : vector<1x128xf32> to vector<8x128xf32>
    %38 = arith.addf %36, %37 : vector<8x128xf32>
    %c0_14 = arith.constant 0 : index
    %c0_15 = arith.constant 0 : index
    %39 = vector.load %arg3[%c0_14, %c0_15] : memref<8x128xf32, #tpu.memory_space<vmem>>, vector<8x128xf32>
    tpu.vector_store %arg3[%c0_14, %c0_15], %38 {strides = array<i32>} : memref<8x128xf32, #tpu.memory_space<vmem>>, vector<8x128xf32>,
    return
  }
}

</mosaic_0001>

<bundles_post_ra>
// kernel: tpu_custom_call.1
= control target key start
LH: loop header
LB: loop body
LE: loop exit
PB: predicated region body
PF: predicated region fallthrough
CT: control target
= control target key end

     0   :  { %8 = vsyncpa [#allocation3], 0  ;;  %s1410_s0 = inlined_call_operand.hbm [shape: f32[8,128], index: 0, kind: input, shape index: {}]   ;;  %s1411_s1 = inlined_call_operand.hbm [shape: f32[8,128], index: 1, kind: input, shape index: {}]   ;;  %s1412_s2 = inlined_call_operand.hbm [shape: f32[2,128,128], index: 2, kind: input, shape index: {}]   ;;  %s1413_s3 = inlined_call_operand.hbm [shape: f32[8,128], index: 3, kind: output, shape index: {}]  }
   0x1   :  { %9 = vsyncpa [#allocation6], 0 }
   0x2   :  { %10 = vsyncpa [#allocation4], 0  ;;  %s1166_s12 = smov [#allocation5]   ;;  %s1167_s14 = smov [#allocation2]  }
   0x3   :  { %s27_s13 = sshll.u32 %s1166_s12, 4  ;;  %s17_s15 = sshll.u32 %s1167_s14, 4  ;;  %s28_s13 = int_to_ptr.vmem [resolvable:$true] %s27_s13  ;;  %s18_s15 = int_to_ptr.vmem [resolvable:$true] %s17_s15 }
   0x4   :  { %s1072_s18 = scalar_lea.hbm %s1411_s1, 128 }
   0x5   :  { %p1073_p0 = scmp.ne.s32.totalorder %s1411_s1, %s1072_s18  ;;  %p1076_p1 = scmp.lt.u32.totalorder %s1072_s18, %s1411_s1 }
   0x7   :  { %p1078_p2 = pnand %p1076_p1, %p1073_p0 }
   0x9   :  { %1081 = shalt.err (!%p1078_p2)
}
   0xa   :  { %s1082_s23 = scalar_lea.vmem %s28_s13, 128  ;;  %p1087_p4 = scmp.lt.s32.totalorder %s28_s13, %s28_s13 }
   0xb   :  { %p1083_p3 = scmp.ne.s32.totalorder %s28_s13, %s1082_s23  ;;  %p1088_p5 = scmp.lt.s32.totalorder %s1082_s23, %s1082_s23 }
   0xd   :  { %p1089_p6 = por %p1088_p5, %p1087_p4 }
   0xf   :  { %p1090_p7 = pnand %p1089_p6, %p1083_p3 }
  0x11   :  { %1093 = shalt.err (!%p1090_p7)
}
  0x12   :  { %30 = dma.hbm_to_vmem [thread:$0]  %s1411_s1, 128, %s28_s13, [#allocation6]  }
  0x13   :  { %s1094_s28 = scalar_lea.hbm %s1410_s0, 128 }
  0x14   :  { %p1095_p8 = scmp.ne.s32.totalorder %s1410_s0, %s1094_s28  ;;  %p1098_p9 = scmp.lt.u32.totalorder %s1094_s28, %s1410_s0 }
  0x16   :  { %p1100_p10 = pnand %p1098_p9, %p1095_p8 }
  0x18   :  { %1103 = shalt.err (!%p1100_p10)
}
  0x19   :  { %s1104_s6 = scalar_lea.vmem %s18_s15, 128  ;;  %p1109_p12 = scmp.lt.s32.totalorder %s18_s15, %s18_s15 }
  0x1a   :  { %p1105_p11 = scmp.ne.s32.totalorder %s18_s15, %s1104_s6  ;;  %p1110_p13 = scmp.lt.s32.totalorder %s1104_s6, %s1104_s6 }
  0x1c   :  { %p1111_p0 = por %p1110_p13, %p1109_p12 }
  0x1e   :  { %p1112_p1 = pnand %p1111_p0, %p1105_p11 }
  0x20   :  { %1115 = shalt.err (!%p1112_p1)
}
  0x21   :  { %20 = dma.hbm_to_vmem [thread:$0]  %s1410_s0, 128, %s18_s15, [#allocation3]  }
  0x22   :  { %s1168_s8 = smov [#allocation7]   ;;  %s1116_s12 = scalar_lea.hbm %s1412_s2, 4096 }
  0x23   :  { %s36_s9 = sshll.u32 %s1168_s8, 4  ;;  %p1117_p2 = scmp.ne.s32.totalorder %s1412_s2, %s1116_s12  ;;  %s37_s9 = int_to_ptr.vmem [resolvable:$true] %s36_s9 }
  0x24   :  { %p1120_p3 = scmp.lt.u32.totalorder %s1116_s12, %s1412_s2 }
  0x26   :  { %p1122_p4 = pnand %p1120_p3, %p1117_p2 }
  0x28   :  { %1125 = shalt.err (!%p1122_p4)
}
  0x29   :  { %s1126_s18 = scalar_lea.vmem %s37_s9, 4096  ;;  %p1131_p6 = scmp.lt.s32.totalorder %s37_s9, %s37_s9 }
  0x2a   :  { %p1127_p5 = scmp.ne.s32.totalorder %s37_s9, %s1126_s18  ;;  %p1132_p7 = scmp.lt.s32.totalorder %s1126_s18, %s1126_s18 }
  0x2c   :  { %p1133_p8 = por %p1132_p7, %p1131_p6 }
  0x2e   :  { %p1134_p9 = pnand %p1133_p8, %p1127_p5 }
  0x30   :  { %1137 = shalt.err (!%p1134_p9)
}
  0x31   :  { %s1169_s0 = smov 128   ;;  %s1170_s15 = smov 8  }
  0x32   :  { %42 = dma.hbm_to_vmem [thread:$0]  %s1412_s2, 4096, %s37_s9, [#allocation6], %s1169_s0, %s1169_s0, %s1170_s15  }
  0x33   :  { %1160 = dma.done.wait [#allocation3], 128  }
  0x34   :  { %1161 = vsyncadd [#allocation3], 4294967168 }
  0x35   :  { %1162 = dma.done.wait [#allocation6], 4224  }
  0x36   :  { %1163 = vsyncadd [#allocation6], 4294963072  ;;  %v1171_v0 = vmov 0.0|0.0   ;;  %vm1172_vm0 = vmmov 0   ;;  %v1173_v1 = vmov 0.0   ;;  %v54_v2 = vld [vmem:[#allocation7] sm:$0xff]  ;;  %v87_v27 = vlaneseq }
  0x37   :  { %927 = vmatprep.subr.bf16.mxu0 %v1171_v0  ;;  %828 = vmatprep.mubr.msk.f32.mxu0 %vm1172_vm0, %v1173_v1  ;;  %v55_v3 = vld [vmem:[#allocation7 + $0x8] sm:$0xff]  ;;  %v56_v4 = vld [vmem:[#allocation7 + $0x10] sm:$0xff]  ;;  %v57_v6 = vld [vmem:[#allocation7 + $0x18] sm:$0xff]  ;;  %vm208_vm1 = vcmask 64512   ;;  %s1174_s2 = smov [#allocation8]  }
  0x38   :  { %v928_v5 = vpack.c.bf16 %v55_v3, %v54_v2  ;;  %v931_v7 = vpack.c.bf16 %v57_v6, %v56_v4  ;;  %v58_v8 = vld [vmem:[#allocation7 + $0x20] sm:$0xff]  ;;  %v59_v9 = vld [vmem:[#allocation7 + $0x28] sm:$0xff]  ;;  %v60_v11 = vld [vmem:[#allocation7 + $0x30] sm:$0xff]  ;;  %v1244_v28 = vshrl.u32 %v87_v27, 7  ;;  %s702_s21 = sshll.u32 %s1174_s2, 4  ;;  %s703_s21 = int_to_ptr.vmem [resolvable:$true] %s702_s21 }
  0x39   :  { %v934_v10 = vpack.c.bf16 %v59_v9, %v58_v8  ;;  %v61_v12 = vld [vmem:[#allocation7 + $0x38] sm:$0xff]  ;;  %v62_v14 = vld [vmem:[#allocation7 + $0x40] sm:$0xff]  ;;  %v63_v15 = vld [vmem:[#allocation7 + $0x48] sm:$0xff]  ;;  %s1138_s22 = scalar_lea.vmem %s703_s21, 128  ;;  %p1143_p11 = scmp.lt.s32.totalorder %s703_s21, %s703_s21 }
  0x3a   :  { %929 = vmatpush3.bf16.msra.mxu0 %v928_v5  ;;  %v937_v13 = vpack.c.bf16 %v61_v12, %v60_v11  ;;  %v940_v16 = vpack.c.bf16 %v63_v15, %v62_v14  ;;  %v64_v17 = vld [vmem:[#allocation7 + $0x50] sm:$0xff]  ;;  %v65_v18 = vld [vmem:[#allocation7 + $0x58] sm:$0xff]  ;;  %v66_v20 = vld [vmem:[#allocation7 + $0x60] sm:$0xff]  ;;  %v89_v29 = vsub.s32 0, %v1244_v28  ;;  %v169_v32 = vsub.s32 2, %v1244_v28  ;;  %p1139_p10 = scmp.ne.s32.totalorder %s703_s21, %s1138_s22  ;;  %p1144_p12 = scmp.lt.s32.totalorder %s1138_s22, %s1138_s22 }
  0x3b   :  { %930 = vmatprep.subr.bf16.mxu0 %v1171_v0  ;;  %v943_v19 = vpack.c.bf16 %v65_v18, %v64_v17  ;;  %v67_v21 = vld [vmem:[#allocation7 + $0x68] sm:$0xff]  ;;  %v68_v23 = vld [vmem:[#allocation7 + $0x70] sm:$0xff]  ;;  %v69_v24 = vld [vmem:[#allocation7 + $0x78] sm:$0xff]  ;;  %v164_v33 = vsub.s32 1, %v1244_v28  ;;  %v174_v58 = vsub.s32 5, %v1244_v28 }
  0x3c   :  { %v946_v22 = vpack.c.bf16 %v67_v21, %v66_v20  ;;  %v949_v25 = vpack.c.bf16 %v69_v24, %v68_v23  ;;  %v52_v26 = vld [vmem:[#allocation2] sm:$0xff]  ;;  %v1247_v30 = vld [vmem:[#allocation5] sm:$0xff]  ;;  %p1145_p13 = por %p1144_p12, %p1143_p11 }
  0x3d   :  { %v90_v31 = vrot.slane %v1247_v30, %v89_v29  ;;  %v170_v37 = vrot.slane %v1247_v30, %v169_v32  ;;  %v165_v38 = vrot.slane %v1247_v30, %v164_v33  ;;  %v175_v59 = vrot.slane %v1247_v30, %v174_v58 }
  0x3e   :  { %932 = vmatpush3.bf16.msra.mxu0 %v931_v7  ;;  %p1146_p0 = pnand %p1145_p13, %p1139_p10 }
  0x3f   :  { %933 = vmatprep.subr.bf16.mxu0 %v1171_v0 }
  0x42   :  { %935 = vmatpush3.bf16.msra.mxu0 %v934_v10 }
  0x43   :  { %936 = vmatprep.subr.bf16.mxu0 %v1171_v0 }
  0x46   :  { %938 = vmatpush3.bf16.msra.mxu0 %v937_v13 }
  0x47   :  { %939 = vmatprep.subr.bf16.mxu0 %v1171_v0 }
  0x4a   :  { %941 = vmatpush3.bf16.msra.mxu0 %v940_v16 }
  0x4b   :  { %942 = vmatprep.subr.bf16.mxu0 %v1171_v0 }
  0x4e   :  { %944 = vmatpush3.bf16.msra.mxu0 %v943_v19 }
  0x4f   :  { %945 = vmatprep.subr.bf16.mxu0 %v1171_v0 }
  0x52   :  { %947 = vmatpush3.bf16.msra.mxu0 %v946_v22 }
  0x53   :  { %948 = vmatprep.subr.bf16.mxu0 %v1171_v0 }
  0x56   :  { %950 = vmatpush3.bf16.msra.mxu0 %v949_v25 }
  0x57   :  { %975 = vmatprep.subr.bf16.mxu0 %v1171_v0 }
  0x59   :  { %829 = vmatmul.mubr.f32.vlgmr.msra.gmra.mrb[0].mxu0 %v52_v26 }
  0x5a   :  { %924 = vmatprep.mubr.msk.f32.mxu0 %vm1172_vm0, %v1173_v1 }
 0x12c   :  { %v157_v34 = vpop.f32.mrb[0].mxu0 }
 0x12d   :  { %v158_v35 = vadd.f32 %v157_v34, %v90_v31  ;;  %v830_v36 = vpop.f32.mrb[1].mxu0 }
 0x12f   :  { %v1254_v39 = vmax.f32 %v158_v35, 0.0 }
 0x131   :  { %v171_v40 = vmul.f32 %v170_v37, %v1254_v39  ;;  %v166_v41 = vmul.f32 %v165_v38, %v1254_v39 }
 0x133   :  { %831 = vmatprep.subr.mxu1 %v171_v40  ;;  %176 = vxpose.xlu0.b32.start.end [1/1] (short) %v166_v41, 128 }
 0x134   :  { %832 = vmatpush3.msra.mxu1 %v171_v40 }
 0x135   :  { %951 = vmatprep.subr.bf16.mxu1 %v1171_v0 }
 0x1b3   :  { %v192_v42 = vpop.trf.xlu0 }
 0x1b4   :  { %833 = vmatprep.mubr.msk.f32.mxu1 %vm208_vm1, %v192_v42 }
 0x1b7   :  { %v193_v43 = vpop.trf.xlu0 }
 0x1b8   :  { %834 = vmatmul.mubr.msk.f32.vlgmr.msra.gmra.mrb[0].mxu1 %vm208_vm1, %v193_v43 }
 0x1bb   :  { %v194_v44 = vpop.trf.xlu0 }
 0x1bc   :  { %836 = vmatprep.mubr.msk.f32.mxu1 %vm208_vm1, %v194_v44 }
 0x1bf   :  { %v195_v45 = vpop.trf.xlu0 }
 0x1c0   :  { %837 = vmatmul.mubr.msk.f32.gmra.mrb[2].mxu1 %vm208_vm1, %v195_v45 }
 0x1c3   :  { %v196_v46 = vpop.trf.xlu0 }
 0x1c4   :  { %839 = vmatprep.mubr.msk.f32.mxu1 %vm208_vm1, %v196_v46 }
 0x1c7   :  { %v197_v47 = vpop.trf.xlu0 }
 0x1c8   :  { %840 = vmatmul.mubr.msk.f32.gmra.mrb[4].mxu1 %vm208_vm1, %v197_v47 }
 0x1cb   :  { %v198_v48 = vpop.trf.xlu0 }
 0x1cc   :  { %842 = vmatprep.mubr.msk.f32.mxu1 %vm208_vm1, %v198_v48 }
 0x1cf   :  { %v199_v49 = vpop.trf.xlu0 }
 0x1d0   :  { %843 = vmatmul.mubr.msk.f32.gmra.mrb[6].mxu1 %vm208_vm1, %v199_v49 }
 0x1d3   :  { %v200_v50 = vpop.trf.xlu0 }
 0x1d4   :  { %845 = vmatprep.mubr.msk.f32.mxu1 %vm208_vm1, %v200_v50 }
 0x1d7   :  { %v201_v51 = vpop.trf.xlu0 }
 0x1d8   :  { %846 = vmatmul.mubr.msk.f32.gmra.mrb[8].mxu1 %vm208_vm1, %v201_v51 }
 0x1db   :  { %v202_v52 = vpop.trf.xlu0 }
 0x1dc   :  { %848 = vmatprep.mubr.msk.f32.mxu1 %vm208_vm1, %v202_v52 }
 0x1df   :  { %v203_v53 = vpop.trf.xlu0 }
 0x1e0   :  { %849 = vmatmul.mubr.msk.f32.gmra.mrb[10].mxu1 %vm208_vm1, %v203_v53 }
 0x1e3   :  { %v204_v54 = vpop.trf.xlu0 }
 0x1e4   :  { %851 = vmatprep.mubr.msk.f32.mxu1 %vm208_vm1, %v204_v54 }
 0x1e7   :  { %v205_v55 = vpop.trf.xlu0 }
 0x1e8   :  { %852 = vmatmul.mubr.msk.f32.gmra.mrb[12].mxu1 %vm208_vm1, %v205_v55 }
 0x1eb   :  { %v206_v56 = vpop.trf.xlu0 }
 0x1ec   :  { %854 = vmatprep.mubr.msk.f32.mxu1 %vm208_vm1, %v206_v56 }
 0x1ef   :  { %v207_v57 = vpop.trf.xlu0 }
 0x1f0   :  { %855 = vmatmul.mubr.msk.f32.gmra.mrb[14].mxu1 %vm208_vm1, %v207_v57 }
 0x1f1   :  { %889 = vmatprep.mubr.msk.f32.mxu1 %vm1172_vm0, %v1173_v1 }
 0x28b   :  { %v835_v60 = vpop.f32.mrb[0].mxu1 }
 0x28c   :  { %v329_v61 = vadd.f32 %v835_v60, %v175_v59  ;;  %v323_v62 = vpop.f32.mrb[1].mxu1 }
 0x28d   :  { %v324_v63 = vadd.f32 %v323_v62, %v175_v59 }
 0x28e   :  { %404 = vmax.xlane.f32.xlu1 %v329_v61 }
 0x28f   :  { %402 = vmax.xlane.f32.xlu0 %v324_v63 }
 0x293   :  { %v838_v2 = vpop.f32.mrb[2].mxu1 }
 0x294   :  { %v339_v3 = vadd.f32 %v838_v2, %v175_v59  ;;  %v333_v4 = vpop.f32.mrb[3].mxu1 }
 0x295   :  { %v334_v5 = vadd.f32 %v333_v4, %v175_v59 }
 0x296   :  { %408 = vmax.xlane.f32.xlu1 %v339_v3 }
 0x29a   :  { %406 = vmax.xlane.f32.xlu1 %v334_v5 }
 0x29b   :  { %v841_v6 = vpop.f32.mrb[4].mxu1 }
 0x29c   :  { %v349_v7 = vadd.f32 %v841_v6, %v175_v59  ;;  %v343_v8 = vpop.f32.mrb[5].mxu1 }
 0x29d   :  { %v344_v1 = vadd.f32 %v343_v8, %v175_v59 }
 0x29e   :  { %412 = vmax.xlane.f32.xlu1 %v349_v7 }
 0x2a2   :  { %410 = vmax.xlane.f32.xlu1 %v344_v1 }
 0x2a3   :  { %v844_v9 = vpop.f32.mrb[6].mxu1 }
 0x2a4   :  { %v359_v10 = vadd.f32 %v844_v9, %v175_v59  ;;  %v353_v11 = vpop.f32.mrb[7].mxu1 }
 0x2a5   :  { %v1279_v12 = vadd.f32 %v353_v11, %v175_v59 }
 0x2a6   :  { %416 = vmax.xlane.f32.xlu1 %v359_v10 }
 0x2aa   :  { %414 = vmax.xlane.f32.xlu1 %v1279_v12 }
 0x2ab   :  { %v847_v13 = vpop.f32.mrb[8].mxu1 }
 0x2ac   :  { %v1282_v14 = vadd.f32 %v847_v13, %v175_v59  ;;  %v363_v15 = vpop.f32.mrb[9].mxu1 }
 0x2ad   :  { %v1285_v16 = vadd.f32 %v363_v15, %v175_v59 }
 0x2ae   :  { %420 = vmax.xlane.f32.xlu1 %v1282_v14 }
 0x2b2   :  { %418 = vmax.xlane.f32.xlu1 %v1285_v16 }
 0x2b3   :  { %v850_v17 = vpop.f32.mrb[10].mxu1 }
 0x2b4   :  { %v1288_v18 = vadd.f32 %v850_v17, %v175_v59  ;;  %v373_v19 = vpop.f32.mrb[11].mxu1 }
 0x2b5   :  { %v1291_v20 = vadd.f32 %v373_v19, %v175_v59 }
 0x2b6   :  { %424 = vmax.xlane.f32.xlu1 %v1288_v18 }
 0x2ba   :  { %422 = vmax.xlane.f32.xlu1 %v1291_v20 }
 0x2bb   :  { %v853_v21 = vpop.f32.mrb[12].mxu1 }
 0x2bc   :  { %v1294_v22 = vadd.f32 %v853_v21, %v175_v59  ;;  %v383_v23 = vpop.f32.mrb[13].mxu1 }
 0x2bd   :  { %v1297_v24 = vadd.f32 %v383_v23, %v175_v59 }
 0x2be   :  { %428 = vmax.xlane.f32.xlu1 %v1294_v22 }
 0x2c2   :  { %426 = vmax.xlane.f32.xlu1 %v1297_v24 }
 0x2c3   :  { %v856_v25 = vpop.f32.mrb[14].mxu1 }
 0x2c4   :  { %v393_v26 = vpop.f32.mrb[15].mxu1  ;;  %v1303_v29 = vadd.f32 %v856_v25, %v175_v59 }
 0x2c5   :  { %v1300_v27 = vadd.f32 %v393_v26, %v175_v59 }
 0x2c7   :  { %430 = vmax.xlane.f32.xlu1 %v1300_v27 }
 0x2cb   :  { %432 = vmax.xlane.f32.xlu1 %v1303_v29 }
 0x31b   :  { %v405_v31 = vpop.xlane.xlu1 %404 }
 0x31c   :  { %v435_v32 = vsub.f32 %v329_v61, %v405_v31  ;;  %v403_v33 = vpop.xlane.xlu0 %402 }
 0x31d   :  { %v434_v34 = vsub.f32 %v324_v63, %v403_v33 }
 0x31e   :  { %v452_v35 = vmul.f32 1.442695, %v435_v32 }
 0x31f   :  { %v450_v36 = vmul.f32 1.442695, %v434_v34 }
 0x320   :  { %1008 = vpow2.f32 %v452_v35 }
 0x321   :  { %1010 = vpow2.f32 %v450_v36  ;;  %v71_v36 = vld [vmem:[#allocation7 + $0x80] sm:$0xff] }
 0x323   :  { %v409_v37 = vpop.xlane.xlu1 %408 }
 0x324   :  { %v437_v38 = vsub.f32 %v339_v3, %v409_v37  ;;  %v73_v37 = vld [vmem:[#allocation7 + $0x90] sm:$0xff] }
 0x326   :  { %v456_v40 = vmul.f32 1.442695, %v437_v38 }
 0x327   :  { %v407_v41 = vpop.xlane.xlu1 %406 }
 0x328   :  { %1012 = vpow2.f32 %v456_v40  ;;  %v436_v42 = vsub.f32 %v334_v5, %v407_v41  ;;  %v74_v40 = vld [vmem:[#allocation7 + $0x98] sm:$0xff] }
 0x329   :  { %v979_v41 = vpack.c.bf16 %v74_v40, %v73_v37 }
 0x32a   :  { %v1306_v43 = vpop.eup %1008  ;;  %v454_v44 = vmul.f32 1.442695, %v436_v42  ;;  %v75_v42 = vld [vmem:[#allocation7 + $0xa0] sm:$0xff] }
 0x32b   :  { %v413_v45 = vpop.xlane.xlu1 %412  ;;  %484 = vadd.xlane.f32.xlu1 %v1306_v43  ;;  %v1309_v47 = vpop.eup %1010 }
 0x32c   :  { %1014 = vpow2.f32 %v454_v44  ;;  %v439_v46 = vsub.f32 %v349_v7, %v413_v45  ;;  %v76_v44 = vld [vmem:[#allocation7 + $0xa8] sm:$0xff] }
 0x32d   :  { %v982_v45 = vpack.c.bf16 %v76_v44, %v75_v42 }
 0x32e   :  { %v460_v48 = vmul.f32 1.442695, %v439_v46  ;;  %v77_v46 = vld [vmem:[#allocation7 + $0xb0] sm:$0xff] }
 0x32f   :  { %v411_v49 = vpop.xlane.xlu1 %410  ;;  %482 = vadd.xlane.f32.xlu1 %v1309_v47 }
 0x330   :  { %1016 = vpow2.f32 %v460_v48  ;;  %v438_v50 = vsub.f32 %v344_v1, %v411_v49  ;;  %v78_v48 = vld [vmem:[#allocation7 + $0xb8] sm:$0xff] }
 0x331   :  { %v985_v49 = vpack.c.bf16 %v78_v48, %v77_v46 }
 0x332   :  { %v1312_v51 = vpop.eup %1012  ;;  %v458_v52 = vmul.f32 1.442695, %v438_v50  ;;  %v79_v50 = vld [vmem:[#allocation7 + $0xc0] sm:$0xff] }
 0x333   :  { %v417_v53 = vpop.xlane.xlu1 %416  ;;  %488 = vadd.xlane.f32.xlu1 %v1312_v51 }
 0x334   :  { %1018 = vpow2.f32 %v458_v52  ;;  %v441_v54 = vsub.f32 %v359_v10, %v417_v53  ;;  %v80_v52 = vld [vmem:[#allocation7 + $0xc8] sm:$0xff] }
 0x335   :  { %v988_v53 = vpack.c.bf16 %v80_v52, %v79_v50 }
 0x336   :  { %v1315_v55 = vpop.eup %1014  ;;  %v464_v56 = vmul.f32 1.442695, %v441_v54  ;;  %v81_v54 = vld [vmem:[#allocation7 + $0xd0] sm:$0xff] }
 0x337   :  { %v415_v57 = vpop.xlane.xlu1 %414  ;;  %486 = vadd.xlane.f32.xlu1 %v1315_v55 }
 0x338   :  { %1020 = vpow2.f32 %v464_v56  ;;  %v440_v58 = vsub.f32 %v1279_v12, %v415_v57  ;;  %v82_v56 = vld [vmem:[#allocation7 + $0xd8] sm:$0xff] }
 0x339   :  { %v991_v57 = vpack.c.bf16 %v82_v56, %v81_v54 }
 0x33a   :  { %v1319_v59 = vpop.eup %1016  ;;  %v462_v60 = vmul.f32 1.442695, %v440_v58  ;;  %v83_v58 = vld [vmem:[#allocation7 + $0xe0] sm:$0xff] }
 0x33b   :  { %v421_v61 = vpop.xlane.xlu1 %420  ;;  %492 = vadd.xlane.f32.xlu1 %v1319_v59 }
 0x33c   :  { %1022 = vpow2.f32 %v462_v60  ;;  %v443_v62 = vsub.f32 %v1282_v14, %v421_v61  ;;  %v84_v60 = vld [vmem:[#allocation7 + $0xe8] sm:$0xff] }
 0x33d   :  { %v994_v61 = vpack.c.bf16 %v84_v60, %v83_v58 }
 0x33e   :  { %v1323_v63 = vpop.eup %1018  ;;  %v468_v2 = vmul.f32 1.442695, %v443_v62  ;;  %v85_v62 = vld [vmem:[#allocation7 + $0xf0] sm:$0xff] }
 0x33f   :  { %v419_v3 = vpop.xlane.xlu1 %418  ;;  %490 = vadd.xlane.f32.xlu1 %v1323_v63 }
 0x340   :  { %1024 = vpow2.f32 %v468_v2  ;;  %v442_v4 = vsub.f32 %v1285_v16, %v419_v3  ;;  %v86_v2 = vld [vmem:[#allocation7 + $0xf8] sm:$0xff] }
 0x341   :  { %v997_v3 = vpack.c.bf16 %v86_v2, %v85_v62 }
 0x342   :  { %v1327_v5 = vpop.eup %1020  ;;  %v466_v6 = vmul.f32 1.442695, %v442_v4 }
 0x343   :  { %v425_v7 = vpop.xlane.xlu1 %424  ;;  %496 = vadd.xlane.f32.xlu1 %v1327_v5 }
 0x344   :  { %1026 = vpow2.f32 %v466_v6  ;;  %v445_v8 = vsub.f32 %v1288_v18, %v425_v7 }
 0x346   :  { %v1331_v1 = vpop.eup %1022  ;;  %v472_v9 = vmul.f32 1.442695, %v445_v8 }
 0x347   :  { %v423_v10 = vpop.xlane.xlu1 %422  ;;  %494 = vadd.xlane.f32.xlu1 %v1331_v1 }
 0x348   :  { %1028 = vpow2.f32 %v472_v9  ;;  %v444_v11 = vsub.f32 %v1291_v20, %v423_v10 }
 0x34a   :  { %v1335_v12 = vpop.eup %1024  ;;  %v470_v13 = vmul.f32 1.442695, %v444_v11 }
 0x34b   :  { %v429_v14 = vpop.xlane.xlu1 %428  ;;  %500 = vadd.xlane.f32.xlu1 %v1335_v12 }
 0x34c   :  { %1030 = vpow2.f32 %v470_v13  ;;  %v447_v15 = vsub.f32 %v1294_v22, %v429_v14 }
 0x34e   :  { %v1339_v16 = vpop.eup %1026  ;;  %v476_v17 = vmul.f32 1.442695, %v447_v15 }
 0x34f   :  { %v427_v18 = vpop.xlane.xlu1 %426  ;;  %498 = vadd.xlane.f32.xlu1 %v1339_v16 }
 0x350   :  { %1032 = vpow2.f32 %v476_v17  ;;  %v446_v19 = vsub.f32 %v1297_v24, %v427_v18 }
 0x352   :  { %v1343_v21 = vpop.eup %1028  ;;  %v474_v20 = vmul.f32 1.442695, %v446_v19 }
 0x353   :  { %504 = vadd.xlane.f32.xlu1 %v1343_v21 }
 0x354   :  { %1034 = vpow2.f32 %v474_v20  ;;  %v431_v23 = vpop.xlane.xlu1 %430 }
 0x355   :  { %v448_v25 = vsub.f32 %v1300_v27, %v431_v23 }
 0x356   :  { %v1347_v26 = vpop.eup %1030 }
 0x357   :  { %v478_v22 = vmul.f32 1.442695, %v448_v25  ;;  %502 = vadd.xlane.f32.xlu1 %v1347_v26 }
 0x358   :  { %v433_v31 = vpop.xlane.xlu1 %432 }
 0x359   :  { %1036 = vpow2.f32 %v478_v22  ;;  %v449_v32 = vsub.f32 %v1303_v29, %v433_v31  ;;  %v72_v29 = vld [vmem:[#allocation7 + $0x88] sm:$0xff] }
 0x35a   :  { %v1351_v33 = vpop.eup %1032  ;;  %v976_v38 = vpack.c.bf16 %v72_v29, %v71_v36 }
 0x35b   :  { %v480_v24 = vmul.f32 1.442695, %v449_v32  ;;  %508 = vadd.xlane.f32.xlu0 %v1351_v33 }
 0x35c   :  { %977 = vmatpush3.bf16.msra.mxu0 %v976_v38 }
 0x35d   :  { %1038 = vpow2.f32 %v480_v24  ;;  %978 = vmatprep.subr.bf16.mxu0 %v1171_v0 }
 0x35e   :  { %v1354_v34 = vpop.eup %1034 }
 0x35f   :  { %506 = vadd.xlane.f32.xlu1 %v1354_v34 }
 0x360   :  { %980 = vmatpush3.bf16.msra.mxu0 %v979_v41 }
 0x361   :  { %981 = vmatprep.subr.bf16.mxu0 %v1171_v0 }
 0x363   :  { %v1357_v27 = vpop.eup %1036 }
 0x364   :  { %510 = vadd.xlane.f32.xlu1 %v1357_v27  ;;  %983 = vmatpush3.bf16.msra.mxu0 %v982_v45 }
 0x365   :  { %984 = vmatprep.subr.bf16.mxu0 %v1171_v0 }
 0x367   :  { %v1360_v35 = vpop.eup %1038 }
 0x368   :  { %512 = vadd.xlane.f32.xlu0 %v1360_v35  ;;  %986 = vmatpush3.bf16.msra.mxu0 %v985_v49 }
 0x369   :  { %987 = vmatprep.subr.bf16.mxu0 %v1171_v0 }
 0x36c   :  { %989 = vmatpush3.bf16.msra.mxu0 %v988_v53 }
 0x36d   :  { %990 = vmatprep.subr.bf16.mxu0 %v1171_v0 }
 0x370   :  { %992 = vmatpush3.bf16.msra.mxu0 %v991_v57 }
 0x371   :  { %993 = vmatprep.subr.bf16.mxu0 %v1171_v0 }
 0x374   :  { %995 = vmatpush3.bf16.msra.mxu0 %v994_v61 }
 0x375   :  { %996 = vmatprep.subr.bf16.mxu0 %v1171_v0 }
 0x378   :  { %998 = vmatpush3.bf16.msra.mxu0 %v997_v3 }
 0x3b8   :  { %v485_v4 = vpop.xlane.xlu1 %484 }
 0x3b9   :  { %1040 = vrcp.f32 %v485_v4 }
 0x3bc   :  { %v483_v6 = vpop.xlane.xlu1 %482 }
 0x3bd   :  { %1042 = vrcp.f32 %v483_v6 }
 0x3c0   :  { %v489_v7 = vpop.xlane.xlu1 %488 }
 0x3c1   :  { %1044 = vrcp.f32 %v489_v7 }
 0x3c3   :  { %v1041_v9 = vpop.eup %1040 }
 0x3c4   :  { %v487_v8 = vpop.xlane.xlu1 %486  ;;  %v517_v14 = vmul.f32 %v1041_v9, %v1306_v43 }
 0x3c5   :  { %1046 = vrcp.f32 %v487_v8 }
 0x3c7   :  { %v1043_v10 = vpop.eup %1042 }
 0x3c8   :  { %v493_v11 = vpop.xlane.xlu1 %492  ;;  %v515_v13 = vmul.f32 %v1043_v10, %v1309_v47 }
 0x3c9   :  { %1048 = vrcp.f32 %v493_v11 }
 0x3ca   :  { %v952_v15 = vpack.c.bf16 %v517_v14, %v515_v13 }
 0x3cb   :  { %v1045_v18 = vpop.eup %1044 }
 0x3cc   :  { %953 = vmatpush3.bf16.msra.mxu1 %v952_v15  ;;  %v491_v17 = vpop.xlane.xlu1 %490  ;;  %v521_v25 = vmul.f32 %v1045_v18, %v1312_v51 }
 0x3cd   :  { %1050 = vrcp.f32 %v491_v17  ;;  %954 = vmatprep.subr.bf16.mxu1 %v1171_v0 }
 0x3cf   :  { %v1047_v19 = vpop.eup %1046 }
 0x3d0   :  { %v497_v20 = vpop.xlane.xlu1 %496  ;;  %v519_v23 = vmul.f32 %v1047_v19, %v1315_v55 }
 0x3d1   :  { %1052 = vrcp.f32 %v497_v20 }
 0x3d2   :  { %v955_v22 = vpack.c.bf16 %v521_v25, %v519_v23 }
 0x3d3   :  { %v1049_v31 = vpop.eup %1048 }
 0x3d4   :  { %956 = vmatpush3.bf16.msra.mxu1 %v955_v22  ;;  %v495_v47 = vpop.xlane.xlu1 %494  ;;  %v525_v36 = vmul.f32 %v1049_v31, %v1319_v59 }
 0x3d5   :  { %1054 = vrcp.f32 %v495_v47  ;;  %957 = vmatprep.subr.bf16.mxu1 %v1171_v0 }
 0x3d7   :  { %v1051_v43 = vpop.eup %1050 }
 0x3d8   :  { %v501_v32 = vpop.xlane.xlu1 %500  ;;  %v523_v24 = vmul.f32 %v1051_v43, %v1323_v63 }
 0x3d9   :  { %1056 = vrcp.f32 %v501_v32 }
 0x3da   :  { %v958_v29 = vpack.c.bf16 %v525_v36, %v523_v24 }
 0x3db   :  { %v1053_v37 = vpop.eup %1052 }
 0x3dc   :  { %959 = vmatpush3.bf16.msra.mxu1 %v958_v29  ;;  %v499_v55 = vpop.xlane.xlu1 %498  ;;  %v529_v41 = vmul.f32 %v1053_v37, %v1327_v5 }
 0x3dd   :  { %1058 = vrcp.f32 %v499_v55  ;;  %960 = vmatprep.subr.bf16.mxu1 %v1171_v0 }
 0x3df   :  { %v1055_v51 = vpop.eup %1054 }
 0x3e0   :  { %v505_v38 = vpop.xlane.xlu1 %504  ;;  %v527_v40 = vmul.f32 %v1055_v51, %v1331_v1 }
 0x3e1   :  { %1060 = vrcp.f32 %v505_v38 }
 0x3e2   :  { %v961_v42 = vpack.c.bf16 %v529_v41, %v527_v40 }
 0x3e3   :  { %v1057_v44 = vpop.eup %1056 }
 0x3e4   :  { %962 = vmatpush3.bf16.msra.mxu1 %v961_v42  ;;  %v503_v63 = vpop.xlane.xlu1 %502  ;;  %v533_v48 = vmul.f32 %v1057_v44, %v1335_v12 }
 0x3e5   :  { %1062 = vrcp.f32 %v503_v63  ;;  %963 = vmatprep.subr.bf16.mxu1 %v1171_v0 }
 0x3e7   :  { %v1059_v59 = vpop.eup %1058 }
 0x3e8   :  { %v509_v45 = vpop.xlane.xlu0 %508  ;;  %v531_v46 = vmul.f32 %v1059_v59, %v1339_v16 }
 0x3e9   :  { %1064 = vrcp.f32 %v509_v45 }
 0x3ea   :  { %v964_v49 = vpack.c.bf16 %v533_v48, %v531_v46 }
 0x3eb   :  { %v1061_v50 = vpop.eup %1060 }
 0x3ec   :  { %965 = vmatpush3.bf16.msra.mxu1 %v964_v49  ;;  %v507_v1 = vpop.xlane.xlu1 %506  ;;  %v537_v53 = vmul.f32 %v1061_v50, %v1343_v21  ;;  %v548_v21 = vsub.s32 3, %v1244_v28 }
 0x3ed   :  { %1066 = vrcp.f32 %v507_v1  ;;  %966 = vmatprep.subr.bf16.mxu1 %v1171_v0 }
 0x3ee   :  { %v549_v4 = vrot.slane %v1247_v30, %v548_v21 }
 0x3ef   :  { %v1063_v5 = vpop.eup %1062 }
 0x3f0   :  { %v535_v52 = vmul.f32 %v1063_v5, %v1347_v26 }
 0x3f1   :  { %v511_v54 = vpop.xlane.xlu1 %510 }
 0x3f2   :  { %v967_v56 = vpack.c.bf16 %v537_v53, %v535_v52  ;;  %1068 = vrcp.f32 %v511_v54 }
 0x3f3   :  { %v1065_v16 = vpop.eup %1064 }
 0x3f4   :  { %968 = vmatpush3.bf16.msra.mxu1 %v967_v56  ;;  %v541_v60 = vmul.f32 %v1065_v16, %v1351_v33 }
 0x3f5   :  { %v513_v57 = vpop.xlane.xlu0 %512  ;;  %969 = vmatprep.subr.bf16.mxu1 %v1171_v0 }
 0x3f6   :  { %1070 = vrcp.f32 %v513_v57 }
 0x3f7   :  { %v1067_v12 = vpop.eup %1066 }
 0x3f8   :  { %v539_v58 = vmul.f32 %v1067_v12, %v1354_v34  ;;  %v550_v34 = vmul.f32 %v549_v4, %v1254_v39 }
 0x3fa   :  { %v970_v61 = vpack.c.bf16 %v541_v60, %v539_v58 }
 0x3fc   :  { %971 = vmatpush3.bf16.msra.mxu1 %v970_v61  ;;  %v1069_v26 = vpop.eup %1068 }
 0x3fd   :  { %972 = vmatprep.subr.bf16.mxu1 %v1171_v0  ;;  %v543_v2 = vmul.f32 %v1069_v26, %v1357_v27  ;;  %v623_v0 = vsub.s32 4, %v1244_v28 }
 0x3ff   :  { %v624_v8 = vrot.slane %v1247_v30, %v623_v0 }
 0x400   :  { %v1071_v62 = vpop.eup %1070 }
 0x401   :  { %v545_v3 = vmul.f32 %v1071_v62, %v1360_v35 }
 0x403   :  { %v973_v6 = vpack.c.bf16 %v545_v3, %v543_v2 }
 0x405   :  { %974 = vmatpush3.bf16.msra.mxu1 %v973_v6 }
 0x408   :  { %890 = vmatmul.mubr.f32.vlgmr.msra.gmra.mrb[16].mxu1 %v550_v34 }
 0x4db   :  { %v617_v33 = vpop.f32.mrb[16].mxu1 }
 0x4dc   :  { %v891_v7 = vpop.f32.mrb[17].mxu1  ;;  %925 = vmatmul.mubr.f32.vlgmr.msra.gmra.mrb[2].mxu0 %v617_v33 }
 0x5af   :  { %v691_v9 = vpop.f32.mrb[2].mxu0 }
 0x5b0   :  { %v692_v27 = vadd.f32 %v691_v9, %v624_v8  ;;  %v926_v10 = vpop.f32.mrb[3].mxu0 }
 0x5b2   :  { %695 = vst [vmem:[#allocation8] sm:$0xff] %v692_v27 }
 0x5b3   :  { %1149 = shalt.err (!%p1146_p0)
}
 0x5b4   :  { %s1150_s25 = scalar_lea.hbm %s1413_s3, 128 }
 0x5b5   :  { %p1151_p1 = scmp.ne.s32.totalorder %s1413_s3, %s1150_s25  ;;  %p1154_p2 = scmp.lt.u32.totalorder %s1150_s25, %s1413_s3 }
 0x5b7   :  { %p1156_p3 = pnand %p1154_p2, %p1151_p1 }
 0x5b9   :  { %1159 = shalt.err (!%p1156_p3)
}
 0x5ba   :  { %705 = dma.vmem_to_hbm [thread:$0]  %s703_s21, 128, %s1413_s3, [#allocation4]  }
 0x5bb   :  { %1164 = dma.done.wait [#allocation4], 128  }
 0x5bc   :  { %1165 = vsyncadd [#allocation4], 4294967168 }
 0x5bd   :  { %709 = vsyncpa [#allocation3], 1 }
 0x5be   :  { %710 = vsyncpa [#allocation6], 1 }
 0x5bf   :  { %711 = vsyncpa [#allocation4], 1 }

</bundles_post_ra>
